<compile_context>
chip_gen: v7x
topology: tpu7x:2x2x1
jax: 0.10.0
libtpu: 0.0.40
codegen_flags: <defaults>
</compile_context>

<pallas_src>
import jax
import jax.numpy as jnp
from jax.experimental import pallas as pl
from jax.experimental.pallas import tpu as pltpu


# ----------------------------------------------------------------------------
# Fused Pallas kernel
# ----------------------------------------------------------------------------

def _dueling_head_kernel(x_ref, w1_ref, b1_ref, wq_ref, bq_ref, o_ref):
    # x: (tm, dim) f32 ; w1: (dim, dh) bf16 ; wq: (dh, ab) bf16
    x = x_ref[...]

    # stem: Linear(dim -> dim_hidden) + SiLU   (bf16 MXU, f32 accumulate)
    h = jnp.dot(x.astype(jnp.bfloat16), w1_ref[...],
                preferred_element_type=jnp.float32)
    h = h + b1_ref[...]                                       # (1, dh) broadcast
    # SiLU: exp and reciprocal both on the EUP slot
    h = h * pl.reciprocal(1.0 + jnp.exp(-h), approx=True)

    # fused (advantages - mean) + value head: single Linear(dh -> action_bins)
    q = jnp.dot(h.astype(jnp.bfloat16), wq_ref[...],
                preferred_element_type=jnp.float32)
    o_ref[...] = (q + bq_ref[...]).astype(o_ref.dtype)


def dueling_head_forward(x, params, *, max_tile=1024, out_dtype=jnp.float32):
    """x: (..., dim) -> (..., action_bins). Single fused pallas_call."""
    *lead, dim = x.shape
    w1 = params["w1"]        # (dim, dh)
    b1 = params["b1"]        # (dh,)
    wa = params["wa"]        # (dh, action_bins)
    ba = params["ba"]        # (action_bins,)
    wv = params["wv"]        # (dh,)
    bv = params["bv"]        # ()
    dh = w1.shape[1]
    ab = wa.shape[1]

    # Fold mean-centering + value head into the advantage projection:
    #   mean_bins(h @ wa + ba) = h @ mean(wa, axis=1) + mean(ba)
    #   q = (h @ wa + ba) - mean_bins(...) + (h @ wv + bv)
    #     = h @ (wa - mean(wa,1) + wv[:,None]) + (ba - mean(ba) + bv)
    wq = (wa - jnp.mean(wa, axis=1, keepdims=True) + wv[:, None])
    bq = (ba - jnp.mean(ba) + bv)

    w1_b = w1.astype(jnp.bfloat16)
    wq_b = wq.astype(jnp.bfloat16)
    b1_r = b1.reshape(1, dh).astype(jnp.float32)
    bq_r = bq.reshape(1, ab).astype(jnp.float32)

    x2 = x.reshape(-1, dim).astype(jnp.float32)
    M = x2.shape[0]

    # Row-tile selection (no padding; Pallas masks the ragged last block):
    #  * small problems -> one block covering all rows (block == full dim, so
    #    the (8,128) divisibility rule is satisfied even for odd M)
    #  * M >= 512 -> keep >= 2 grid steps so v7x's two TensorCores both run,
    #    capped at max_tile rows to amortize per-grid-step overhead.
    if M <= 512:
        tm = M
    else:
        half = -(-M // 2)                 # ceil(M / 2)
        half = ((half + 7) // 8) * 8      # sublane multiple
        tm = min(max_tile, half)
    grid = pl.cdiv(M, tm)

    out = pl.pallas_call(
        _dueling_head_kernel,
        out_shape=jax.ShapeDtypeStruct((M, ab), out_dtype),
        grid=(grid,),
        in_specs=[
            pl.BlockSpec((tm, dim), lambda i: (i, 0)),   # x rows
            pl.BlockSpec((dim, dh), lambda i: (0, 0)),   # W1 (bf16)
            pl.BlockSpec((1, dh), lambda i: (0, 0)),     # b1
            pl.BlockSpec((dh, ab), lambda i: (0, 0)),    # Wq folded (bf16)
            pl.BlockSpec((1, ab), lambda i: (0, 0)),     # bq folded
        ],
        out_specs=pl.BlockSpec((tm, ab), lambda i: (i, 0)),
        compiler_params=pltpu.CompilerParams(
            dimension_semantics=("parallel",)),
    )(x2, w1_b, b1_r, wq_b, bq_r)

    return out.reshape(*lead, ab)


# ----------------------------------------------------------------------------
# Pure-JAX reference (for correctness check)
# ----------------------------------------------------------------------------

def dueling_head_ref(x, params):
    h = x @ params["w1"] + params["b1"]
    h = h * jax.nn.sigmoid(h)
    adv = h @ params["wa"] + params["ba"]
    adv = adv - jnp.mean(adv, axis=-1, keepdims=True)
    val = (h @ params["wv"])[..., None] + params["bv"]
    return val + adv


# ----------------------------------------------------------------------------
# Deterministic parameter init (matches torch nn.Linear default init scheme)
# ----------------------------------------------------------------------------

def init_params(key, dim, expansion_factor=2, action_bins=256):
    dh = dim * expansion_factor
    ks = jax.random.split(key, 6)

    def unif(k, shape, fan_in):
        bound = 1.0 / (fan_in ** 0.5)
        return jax.random.uniform(k, shape, jnp.float32, -bound, bound)

    return dict(
        w1=unif(ks[0], (dim, dh), dim),
        b1=unif(ks[1], (dh,), dim),
        wa=unif(ks[2], (dh, action_bins), dh),
        ba=unif(ks[3], (action_bins,), dh),
        wv=unif(ks[4], (dh,), dh),
        bv=unif(ks[5], (), dh),
    )


# ----------------------------------------------------------------------------
# Main
# ----------------------------------------------------------------------------

if __name__ == "__main__":
    dim, expansion_factor, action_bins = 32, 2, 256

    key = jax.random.PRNGKey(0)
    kp, kx = jax.random.split(key)
    params = init_params(kp, dim, expansion_factor, action_bins)

    B, S = 2, 8
    x = jax.random.normal(kx, (B, S, dim), jnp.float32)

    q = jax.block_until_ready(dueling_head_forward(x, params))
    assert q.shape == (B, S, action_bins)

    ref = dueling_head_ref(x, params)
    # bf16 MXU inputs + approx reciprocal change rounding slightly; f32 accum.
    assert bool(jnp.allclose(q, ref, rtol=2e-2, atol=2e-2)), "mismatch vs reference"

    # also exercise a rank-2 input (single token per batch element)
    q2 = jax.block_until_ready(dueling_head_forward(x[:, 0, :], params))
    assert q2.shape == (B, action_bins)
    ref2 = dueling_head_ref(x[:, 0, :], params)
    assert bool(jnp.allclose(q2, ref2, rtol=2e-2, atol=2e-2)), "rank-2 mismatch"

    print("KERNEL_OK")
</pallas_src>

<mosaic_0001>
module attributes {stable_mosaic.version = 11 : i64} {
  func.func @_dueling_head_kernel(%arg0: i32, %arg1: memref<16x32xf32, #tpu.memory_space<vmem>>, %arg2: memref<32x64xbf16, #tpu.memory_space<vmem>>, %arg3: memref<1x64xf32, #tpu.memory_space<vmem>>, %arg4: memref<64x256xbf16, #tpu.memory_space<vmem>>, %arg5: memref<1x256xf32, #tpu.memory_space<vmem>>, %arg6: memref<16x256xf32, #tpu.memory_space<vmem>>) attributes {dimension_semantics = [#tpu.dimension_semantics<parallel>], iteration_bounds = array<i64: 1>, scalar_prefetch = 0 : i64, scratch_operands = 0 : i64, tpu.core_type = #tpu.core_type<tc>, window_params = [{transform_indices = @transform_0, window_bounds = array<i64: 16, 32>}, {pipeline_mode = #tpu.pipeline_mode<synchronous>, transform_indices = @transform_1, window_bounds = array<i64: 32, 64>}, {pipeline_mode = #tpu.pipeline_mode<synchronous>, transform_indices = @transform_2, window_bounds = array<i64: 1, 64>}, {pipeline_mode = #tpu.pipeline_mode<synchronous>, transform_indices = @transform_3, window_bounds = array<i64: 64, 256>}, {pipeline_mode = #tpu.pipeline_mode<synchronous>, transform_indices = @transform_4, window_bounds = array<i64: 1, 256>}, {transform_indices = @transform_5, window_bounds = array<i64: 16, 256>}]} {
    %c0 = arith.constant 0 : index
    %c0_0 = arith.constant 0 : index
    %0 = vector.load %arg1[%c0, %c0_0] : memref<16x32xf32, #tpu.memory_space<vmem>>, vector<16x32xf32>
    %1 = arith.truncf %0 : vector<16x32xf32> to vector<16x32xbf16>
    %c0_1 = arith.constant 0 : index
    %c0_2 = arith.constant 0 : index
    %2 = vector.load %arg2[%c0_1, %c0_2] : memref<32x64xbf16, #tpu.memory_space<vmem>>, vector<32x64xbf16>
    %cst = arith.constant dense<0.000000e+00> : vector<16x64xf32>
    %3 = tpu.matmul %1, %2, %cst {dimension_numbers = #tpu.dot_dimension_numbers<[1], [0], [0], [1], [0, 0, 1, 1], [], []>} : vector<16x32xbf16>, vector<32x64xbf16>, vector<16x64xf32> -> vector<16x64xf32>
    %c0_3 = arith.constant 0 : index
    %c0_4 = arith.constant 0 : index
    %4 = vector.load %arg3[%c0_3, %c0_4] : memref<1x64xf32, #tpu.memory_space<vmem>>, vector<1x64xf32>
    %5 = vector.broadcast %4 : vector<1x64xf32> to vector<16x64xf32>
    %6 = arith.addf %3, %5 : vector<16x64xf32>
    %cst_5 = arith.constant 0.000000e+00 : f32
    %7 = vector.broadcast %cst_5 : f32 to vector<16x64xf32>
    %8 = arith.subf %7, %6 : vector<16x64xf32>
    %9 = math.exp %8 : vector<16x64xf32>
    %cst_6 = arith.constant 1.000000e+00 : f32
    %10 = vector.broadcast %cst_6 : f32 to vector<16x64xf32>
    %11 = arith.addf %10, %9 : vector<16x64xf32>
    %12 = tpu.reciprocal %11 {approx = true} : vector<16x64xf32> -> vector<16x64xf32>
    %13 = arith.mulf %6, %12 : vector<16x64xf32>
    %14 = arith.truncf %13 : vector<16x64xf32> to vector<16x64xbf16>
    %c0_7 = arith.constant 0 : index
    %c0_8 = arith.constant 0 : index
    %15 = vector.load %arg4[%c0_7, %c0_8] : memref<64x256xbf16, #tpu.memory_space<vmem>>, vector<64x256xbf16>
    %cst_9 = arith.constant dense<0.000000e+00> : vector<16x256xf32>
    %16 = tpu.matmul %14, %15, %cst_9 {dimension_numbers = #tpu.dot_dimension_numbers<[1], [0], [0], [1], [0, 0, 1, 1], [], []>} : vector<16x64xbf16>, vector<64x256xbf16>, vector<16x256xf32> -> vector<16x256xf32>
    %c0_10 = arith.constant 0 : index
    %c0_11 = arith.constant 0 : index
    %17 = vector.load %arg5[%c0_10, %c0_11] : memref<1x256xf32, #tpu.memory_space<vmem>>, vector<1x256xf32>
    %18 = vector.broadcast %17 : vector<1x256xf32> to vector<16x256xf32>
    %19 = arith.addf %16, %18 : vector<16x256xf32>
    %c0_12 = arith.constant 0 : index
    %c0_13 = arith.constant 0 : index
    %20 = vector.load %arg6[%c0_12, %c0_13] : memref<16x256xf32, #tpu.memory_space<vmem>>, vector<16x256xf32>
    tpu.vector_store %arg6[%c0_12, %c0_13], %19 {strides = array<i32>} : memref<16x256xf32, #tpu.memory_space<vmem>>, vector<16x256xf32>,
    return
  }
  func.func @transform_0(%arg0: i32) -> (i32, i32) {
    %c0_i32 = arith.constant 0 : i32
    %c0_i32_0 = arith.constant 0 : i32
    return %arg0, %c0_i32 : i32, i32
  }
  func.func @transform_1(%arg0: i32) -> (i32, i32) {
    %c0_i32 = arith.constant 0 : i32
    %c0_i32_0 = arith.constant 0 : i32
    %c0_i32_1 = arith.constant 0 : i32
    return %c0_i32, %c0_i32_0 : i32, i32
  }
  func.func @transform_2(%arg0: i32) -> (i32, i32) {
    %c0_i32 = arith.constant 0 : i32
    %c0_i32_0 = arith.constant 0 : i32
    %c0_i32_1 = arith.constant 0 : i32
    return %c0_i32, %c0_i32_0 : i32, i32
  }
  func.func @transform_3(%arg0: i32) -> (i32, i32) {
    %c0_i32 = arith.constant 0 : i32
    %c0_i32_0 = arith.constant 0 : i32
    %c0_i32_1 = arith.constant 0 : i32
    return %c0_i32, %c0_i32_0 : i32, i32
  }
  func.func @transform_4(%arg0: i32) -> (i32, i32) {
    %c0_i32 = arith.constant 0 : i32
    %c0_i32_0 = arith.constant 0 : i32
    %c0_i32_1 = arith.constant 0 : i32
    return %c0_i32, %c0_i32_0 : i32, i32
  }
  func.func @transform_5(%arg0: i32) -> (i32, i32) {
    %c0_i32 = arith.constant 0 : i32
    %c0_i32_0 = arith.constant 0 : i32
    return %arg0, %c0_i32 : i32, i32
  }
}

</mosaic_0001>

<bundles_post_ra>
// kernel: tpu_custom_call.1
= control target key start
LH: loop header
LB: loop body
LE: loop exit
PB: predicated region body
PF: predicated region fallthrough
CT: control target
= control target key end

     0   :  { %10 = vsyncpa [#allocation3], 0  ;;  %s526_s0 = inlined_call_operand.hbm [shape: f32[16,32], index: 0, kind: input, shape index: {}]   ;;  %s527_s1 = inlined_call_operand.hbm [shape: bf16[32,64], index: 1, kind: input, shape index: {}]   ;;  %s528_s2 = inlined_call_operand.vmem [shape: f32[1,64], index: 2, kind: input, shape index: {}]   ;;  %s529_s3 = inlined_call_operand.hbm [shape: bf16[64,256], index: 3, kind: input, shape index: {}]   ;;  %s530_s4 = inlined_call_operand.vmem [shape: f32[1,256], index: 4, kind: input, shape index: {}]   ;;  %s531_s5 = inlined_call_operand.hbm [shape: f32[16,256], index: 5, kind: output, shape index: {}]  }
   0x1   :  { %11 = vsyncpa [#allocation6], 0 }
   0x2   :  { %12 = vsyncpa [#allocation4], 0  ;;  %s429_s18 = smov [#allocation5]   ;;  %s335_s22 = scalar_lea.hbm %s527_s1, 256 }
   0x3   :  { %s30_s19 = sshll.u32 %s429_s18, 4  ;;  %p336_p0 = scmp.ne.s32.totalorder %s527_s1, %s335_s22  ;;  %s31_s19 = int_to_ptr.vmem [resolvable:$true] %s30_s19 }
   0x4   :  { %p339_p1 = scmp.lt.u32.totalorder %s335_s22, %s527_s1 }
   0x6   :  { %p341_p2 = pnand %p339_p1, %p336_p0 }
   0x8   :  { %344 = shalt.err (!%p341_p2)
}
   0x9   :  { %s345_s27 = scalar_lea.vmem %s31_s19, 256  ;;  %p350_p4 = scmp.lt.s32.totalorder %s31_s19, %s31_s19 }
   0xa   :  { %p346_p3 = scmp.ne.s32.totalorder %s31_s19, %s345_s27  ;;  %p351_p5 = scmp.lt.s32.totalorder %s345_s27, %s345_s27 }
   0xc   :  { %p352_p6 = por %p351_p5, %p350_p4 }
   0xe   :  { %p353_p7 = pnand %p352_p6, %p346_p3 }
  0x10   :  { %356 = shalt.err (!%p353_p7)
}
  0x11   :  { %s430_s28 = smov 64   ;;  %s431_s29 = smov 4  }
  0x12   :  { %36 = dma.hbm_to_vmem [thread:$0]  %s527_s1, 256, %s31_s19, [#allocation6], %s430_s28, %s430_s28, %s431_s29  }
  0x13   :  { %s432_s7 = smov [#allocation2]   ;;  %s357_s11 = scalar_lea.hbm %s526_s0, 256 }
  0x14   :  { %s18_s8 = sshll.u32 %s432_s7, 4  ;;  %p358_p8 = scmp.ne.s32.totalorder %s526_s0, %s357_s11  ;;  %s19_s8 = int_to_ptr.vmem [resolvable:$true] %s18_s8 }
  0x15   :  { %p361_p9 = scmp.lt.u32.totalorder %s357_s11, %s526_s0 }
  0x17   :  { %p363_p10 = pnand %p361_p9, %p358_p8 }
  0x19   :  { %366 = shalt.err (!%p363_p10)
}
  0x1a   :  { %s367_s16 = scalar_lea.vmem %s19_s8, 256  ;;  %p372_p12 = scmp.lt.s32.totalorder %s19_s8, %s19_s8 }
  0x1b   :  { %p368_p11 = scmp.ne.s32.totalorder %s19_s8, %s367_s16  ;;  %p373_p13 = scmp.lt.s32.totalorder %s367_s16, %s367_s16 }
  0x1d   :  { %p374_p0 = por %p373_p13, %p372_p12 }
  0x1f   :  { %p375_p1 = pnand %p374_p0, %p368_p11 }
  0x21   :  { %378 = shalt.err (!%p375_p1)
}
  0x22   :  { %s433_s1 = smov 128   ;;  %s434_s17 = smov 8  }
  0x23   :  { %24 = dma.hbm_to_vmem [thread:$0]  %s526_s0, 256, %s19_s8, [#allocation3], %s433_s1, %s433_s1, %s434_s17  }
  0x24   :  { %s435_s20 = smov [#allocation7]   ;;  %s379_s24 = scalar_lea.hbm %s529_s3, 1024 }
  0x25   :  { %s44_s21 = sshll.u32 %s435_s20, 4  ;;  %p380_p2 = scmp.ne.s32.totalorder %s529_s3, %s379_s24  ;;  %s45_s21 = int_to_ptr.vmem [resolvable:$true] %s44_s21 }
  0x26   :  { %p383_p3 = scmp.lt.u32.totalorder %s379_s24, %s529_s3 }
  0x28   :  { %p385_p4 = pnand %p383_p3, %p380_p2 }
  0x2a   :  { %388 = shalt.err (!%p385_p4)
}
  0x2b   :  { %s389_s29 = scalar_lea.vmem %s45_s21, 1024  ;;  %p394_p6 = scmp.lt.s32.totalorder %s45_s21, %s45_s21 }
  0x2c   :  { %p390_p5 = scmp.ne.s32.totalorder %s45_s21, %s389_s29  ;;  %p395_p7 = scmp.lt.s32.totalorder %s389_s29, %s389_s29 }
  0x2e   :  { %p396_p8 = por %p395_p7, %p394_p6 }
  0x30   :  { %p397_p9 = pnand %p396_p8, %p390_p5 }
  0x32   :  { %400 = shalt.err (!%p397_p9)
}
  0x33   :  { %50 = dma.hbm_to_vmem [thread:$0]  %s529_s3, 1024, %s45_s21, [#allocation6], %s433_s1, %s433_s1, %s434_s17  }
  0x34   :  { %423 = dma.done.wait [#allocation3], 256  }
  0x35   :  { %424 = vsyncadd [#allocation3], 4294967040 }
  0x36   :  { %425 = dma.done.wait [#allocation6], 1280  }
  0x37   :  { %426 = vsyncadd [#allocation6], 4294966016  ;;  %v436_v0 = vmov 0.0   ;;  %vm437_vm0 = vmmov 0   ;;  %v313_v1 = vld [vmem:[#allocation5] sm:$0xff]   ;;  %v314_v2 = vld [vmem:[#allocation5 + $0x8] sm:$0xff]   ;;  %v157_v35 = vlaneseq }
  0x38   :  { %292 = vmatprep.subr.bf16.mxu0 %v436_v0  ;;  %296 = vmatprep.mubr.msk.bf16.mxu0 %vm437_vm0, %v436_v0  ;;  %v63_v3 = vld [vmem:[#allocation2] sm:$0xff]  ;;  %v64_v4 = vld [vmem:[#allocation2 + $0x8] sm:$0xff]  ;;  %vm89_vm1 = vcmask 261120   ;;  %v318_v8 = vld [vmem:[#allocation7 + $0x14] ss:$8 sps:$4 sm:$0xff]   ;;  %v438_v14 = vmov 0  }
  0x39   :  { %293 = vmatpush3.bf16.msra.mxu0 %v313_v1  ;;  %v65_v5 = vpack.c.bf16 %v64_v4, %v63_v3  ;;  %v315_v6 = vld [vmem:[#allocation7 + $0x4] ss:$8 sps:$4 sm:$0xff]   ;;  %v317_v7 = vld [vmem:[#allocation7] ss:$8 sps:$4 sm:$0xff]   ;;  %v320_v9 = vld [vmem:[#allocation7 + $0x10] ss:$8 sps:$4 sm:$0xff]   ;;  %243 = vmatprep.mubr.bf16.mxu1 %v438_v14 }
  0x3a   :  { %294 = vmatprep.subr.bf16.mxu0 %v436_v0  ;;  %211 = vmatprep.subr.bf16.mxu1 %v315_v6  ;;  %v321_v10 = vld [vmem:[#allocation7 + $0x24] ss:$8 sps:$4 sm:$0xff]   ;;  %v323_v11 = vld [vmem:[#allocation7 + $0x20] ss:$8 sps:$4 sm:$0xff]   ;;  %v324_v12 = vld [vmem:[#allocation7 + $0x34] ss:$8 sps:$4 sm:$0xff]  }
  0x3b   :  { %212 = vmatpush1.bf16.msra.mxu1 %v317_v7  ;;  %v326_v13 = vld [vmem:[#allocation7 + $0x30] ss:$8 sps:$4 sm:$0xff]   ;;  %v276_v15 = vld [vmem:[%s528_s2] ss:$0 sm:$0xff]  ;;  %vm207_vm2 = vcmask 523264   ;;  %v158_v36 = vshrl.u32 %v157_v35, 7 }
  0x3c   :  { %213 = vmatprep.subr.bf16.mxu1 %v318_v8  ;;  %v155_v38 = vld [vmem:[%s530_s4] sm:$0x3]  ;;  %s439_s8 = smov [#allocation8]  }
  0x3d   :  { %295 = vmatpush3.bf16.msra.mxu0 %v314_v2  ;;  %v159_v37 = vsub.s32 0, %v158_v36  ;;  %v163_v39 = vsub.s32 1, %v158_v36  ;;  %s263_s9 = sshll.u32 %s439_s8, 4  ;;  %s264_s9 = int_to_ptr.vmem [resolvable:$true] %s263_s9 }
  0x3e   :  { %s401_s10 = scalar_lea.vmem %s264_s9, 512  ;;  %p406_p11 = scmp.lt.s32.totalorder %s264_s9, %s264_s9 }
  0x3f   :  { %214 = vmatpush1.bf16.msra.mxu1 %v320_v9  ;;  %v160_v40 = vrot.slane %v155_v38, %v159_v37  ;;  %v164_v41 = vrot.slane %v155_v38, %v163_v39  ;;  %p402_p10 = scmp.ne.s32.totalorder %s264_s9, %s401_s10  ;;  %p407_p12 = scmp.lt.s32.totalorder %s401_s10, %s401_s10 }
  0x40   :  { %297 = vmatmul.mubr.msk.bf16.vlgmr.msra.gmra.mrb[0].mxu0 %vm89_vm1, %v65_v5  ;;  %215 = vmatprep.subr.bf16.mxu1 %v321_v10 }
  0x41   :  { %p408_p13 = por %p407_p12, %p406_p11 }
  0x43   :  { %216 = vmatpush1.bf16.msra.mxu1 %v323_v11  ;;  %p409_p0 = pnand %p408_p13, %p402_p10 }
  0x44   :  { %217 = vmatprep.subr.bf16.mxu1 %v324_v12 }
  0x47   :  { %218 = vmatpush1.bf16.msra.mxu1 %v326_v13 }
 0x113   :  { %v127_v16 = vpop.f32.mrb[0].mxu0 }
 0x114   :  { %v128_v17 = vadd.f32 %v276_v15, %v127_v16  ;;  %v298_v18 = vpop.f32.mrb[1].mxu0 }
 0x115   :  { %v130_v19 = vpop.f32.mrb[2].mxu0 }
 0x116   :  { %v134_v20 = vsub.f32 0.0, %v128_v17  ;;  %v131_v21 = vadd.f32 %v276_v15, %v130_v19  ;;  %v299_v22 = vpop.f32.mrb[3].mxu0 }
 0x118   :  { %v136_v23 = vmul.f32 1.442695, %v134_v20  ;;  %v135_v24 = vsub.f32 0.0, %v131_v21 }
 0x11a   :  { %327 = vpow2.f32 %v136_v23  ;;  %v138_v25 = vmul.f32 1.442695, %v135_v24 }
 0x11c   :  { %329 = vpow2.f32 %v138_v25 }
 0x124   :  { %v328_v26 = vpop.eup %327 }
 0x125   :  { %v140_v27 = vadd.f32 1.0, %v328_v26 }
 0x126   :  { %v330_v28 = vpop.eup %329 }
 0x127   :  { %331 = vrcp.f32 %v140_v27  ;;  %v141_v29 = vadd.f32 1.0, %v330_v28 }
 0x129   :  { %333 = vrcp.f32 %v141_v29 }
 0x131   :  { %v332_v30 = vpop.eup %331 }
 0x132   :  { %v144_v32 = vmul.f32 %v332_v30, %v128_v17 }
 0x133   :  { %v334_v31 = vpop.eup %333 }
 0x134   :  { %v145_v33 = vmul.f32 %v334_v31, %v131_v21 }
 0x136   :  { %v146_v34 = vpack.c.bf16 %v145_v33, %v144_v32 }
 0x138   :  { %288 = vmatmul.mubr.msk.bf16.vlgmr.msra.gmra.mrb[0].mxu1 %vm207_vm2, %v146_v34 }
 0x20b   :  { %v245_v42 = vpop.f32.mrb[0].mxu1 }
 0x20c   :  { %v246_v43 = vadd.f32 %v245_v42, %v160_v40  ;;  %v247_v44 = vpop.f32.mrb[1].mxu1 }
 0x20d   :  { %v248_v45 = vadd.f32 %v247_v44, %v164_v41  ;;  %v249_v46 = vpop.f32.mrb[2].mxu1 }
 0x20e   :  { %254 = vst [vmem:[#allocation8] sm:$0xff] %v246_v43  ;;  %v250_v47 = vadd.f32 %v249_v46, %v160_v40  ;;  %v251_v48 = vpop.f32.mrb[3].mxu1 }
 0x20f   :  { %255 = vst [vmem:[#allocation8 + $0x8] sm:$0xff] %v248_v45  ;;  %v252_v49 = vadd.f32 %v251_v48, %v164_v41 }
 0x210   :  { %256 = vst [vmem:[#allocation8 + $0x10] sm:$0xff] %v250_v47 }
 0x211   :  { %257 = vst [vmem:[#allocation8 + $0x18] sm:$0xff] %v252_v49 }
 0x212   :  { %412 = shalt.err (!%p409_p0)
}
 0x213   :  { %s413_s12 = scalar_lea.hbm %s531_s5, 512 }
 0x214   :  { %p414_p1 = scmp.ne.s32.totalorder %s531_s5, %s413_s12  ;;  %p417_p2 = scmp.lt.u32.totalorder %s413_s12, %s531_s5 }
 0x216   :  { %p419_p3 = pnand %p417_p2, %p414_p1 }
 0x218   :  { %422 = shalt.err (!%p419_p3)
}
 0x219   :  { %s440_s1 = smov 256   ;;  %s441_s17 = smov 16  }
 0x21a   :  { %269 = dma.vmem_to_hbm [thread:$0]  %s264_s9, 512, %s531_s5, [#allocation4], %s440_s1, %s440_s1, %s441_s17  }
 0x21b   :  { %427 = dma.done.wait [#allocation4], 512  }
 0x21c   :  { %428 = vsyncadd [#allocation4], 4294966784 }
 0x21d   :  { %273 = vsyncpa [#allocation3], 1 }
 0x21e   :  { %274 = vsyncpa [#allocation6], 1 }
 0x21f   :  { %275 = vsyncpa [#allocation4], 1 }

</bundles_post_ra>
